<compile_context>
chip_gen: v6e
topology: v6e:2x2x1
jax: 0.10.0
libtpu: 0.0.40
codegen_flags: <defaults>
</compile_context>

<pallas_src>
import math

import jax
import jax.numpy as jnp
from jax.experimental import pallas as pl
from jax.experimental.pallas import tpu as pltpu

LN_EPS = 1e-5  # torch.nn.LayerNorm default


def _pick_vmem_limit():
    # Per-generation scoped-VMEM budget: ~100 MiB on 128 MiB chips (v5e/v6e),
    # ~48 MiB on v7x (64 MiB physical). Safe fallback if the query fails.
    try:
        cap = int(getattr(pltpu.get_tpu_info(), "vmem_capacity_bytes",
                          64 * 1024 * 1024))
    except Exception:
        cap = 64 * 1024 * 1024
    return int(min(max(cap - 16 * 1024 * 1024, 32 * 1024 * 1024),
                   100 * 1024 * 1024))


VMEM_LIMIT = _pick_vmem_limit()


# ----------------------------- kernel helpers -----------------------------

def _layernorm(x, w, b):
    mean = jnp.mean(x, axis=-1, keepdims=True)
    var = jnp.mean(jnp.square(x - mean), axis=-1, keepdims=True)
    return (x - mean) * jax.lax.rsqrt(var + LN_EPS) * w + b


def _gelu_exact(x):
    # F.gelu default ("none") = exact erf-based GELU
    return 0.5 * x * (1.0 + jax.lax.erf(x * (1.0 / math.sqrt(2.0))))


# ----------------------------- Pallas kernels -----------------------------

def patch_embed_kernel(patches_ref, w_ref, b_ref, clspos_ref, pos_ref, out_ref):
    # patches: (1, N, P) bf16 ; w: (P, E) bf16 ; b: (1, E) f32
    # clspos: (1, E) f32 (cls + pos[0]) ; pos: (N, E) f32 (pos[1:])
    # out: (1, N+1, E) f32
    proj = jnp.dot(patches_ref[0], w_ref[...],
                   preferred_element_type=jnp.float32)
    tokens = proj + b_ref[...] + pos_ref[...]                     # (N, E)
    # single contiguous lane-dense store of the whole token slab
    out_ref[0] = jnp.concatenate([clspos_ref[...], tokens], axis=0)


def vit_blocks_kernel(x_ref, ln1w_ref, ln1b_ref, qkvw_ref, qkvb_ref,
                      projw_ref, projb_ref, ln2w_ref, ln2b_ref,
                      fc1w_ref, fc1b_ref, fc2w_ref, fc2b_ref,
                      out_ref, attn_ref):
    bf16 = jnp.bfloat16
    l = pl.program_id(1)
    _, S, E = out_ref.shape
    H = attn_ref.shape[2]
    hd = E // H

    # out_ref block index is constant across the layer axis -> it stays
    # resident in VMEM and acts as the layer-to-layer activation carry.
    @pl.when(l == 0)
    def _init():
        out_ref[0] = x_ref[0]

    x = out_ref[0]                                                # (S, E) f32

    # --- multi-head self attention on LN1(x) ---
    xn = _layernorm(x, ln1w_ref[0], ln1b_ref[0]).astype(bf16)
    # fused QKV: one lane-dense (S,E)@(E,3E) MXU matmul; 1/sqrt(hd) is
    # already folded into the q columns of the weight/bias wrapper-side.
    qkv = jnp.dot(xn, qkvw_ref[0],
                  preferred_element_type=jnp.float32) + qkvb_ref[0]   # (S, 3E)
    qkv_bf = qkv.astype(bf16)

    # split heads with cheap static lane slices (vreg shuffles, no matmuls)
    qh = jnp.stack([qkv_bf[:, h * hd:(h + 1) * hd] for h in range(H)])
    kh = jnp.stack([qkv_bf[:, E + h * hd:E + (h + 1) * hd] for h in range(H)])
    vh = jnp.stack([qkv_bf[:, 2 * E + h * hd:2 * E + (h + 1) * hd]
                    for h in range(H)])                               # (H,S,hd)

    scores = jnp.einsum("hqd,hkd->hqk", qh, kh,
                        preferred_element_type=jnp.float32)           # (H,S,S)
    scores = scores - jnp.max(scores, axis=-1, keepdims=True)
    p = jnp.exp(scores)
    probs = p * pl.reciprocal(jnp.sum(p, axis=-1, keepdims=True), approx=True)
    attn_ref[0, 0] = probs                      # single fp32 store per step

    ctx = jnp.einsum("hqk,hkd->hqd", probs.astype(bf16), vh,
                     preferred_element_type=jnp.float32)              # (H,S,hd)
    # head-concat along lanes, then ONE (S,E)@(E,E) projection matmul
    ctx2 = jnp.concatenate([ctx[h] for h in range(H)], axis=-1).astype(bf16)
    attn_out = jnp.dot(ctx2, projw_ref[0],
                       preferred_element_type=jnp.float32) + projb_ref[0]
    x = x + attn_out                                                  # residual 1

    # --- MLP on LN2(x) ---
    xn2 = _layernorm(x, ln2w_ref[0], ln2b_ref[0]).astype(bf16)
    h1 = jnp.dot(xn2, fc1w_ref[0],
                 preferred_element_type=jnp.float32) + fc1b_ref[0]
    h1 = _gelu_exact(h1)
    h2 = jnp.dot(h1.astype(bf16), fc2w_ref[0],
                 preferred_element_type=jnp.float32) + fc2b_ref[0]
    out_ref[0] = x + h2                                               # residual 2


def head_kernel(cls_ref, lnw_ref, lnb_ref, hw_ref, hb_ref, out_ref):
    # cls_ref: (B, E)  ->  out_ref: (B, num_classes)
    xn = _layernorm(cls_ref[...], lnw_ref[...], lnb_ref[...])
    out_ref[...] = jnp.dot(xn.astype(jnp.bfloat16), hw_ref[...],
                           preferred_element_type=jnp.float32) + hb_ref[...]


# ----------------------------- wrappers -----------------------------------

def patch_embed(patches, pp):
    B, N, P = patches.shape
    E = pp["patch_w"].shape[1]
    return pl.pallas_call(
        patch_embed_kernel,
        out_shape=jax.ShapeDtypeStruct((B, N + 1, E), jnp.float32),
        grid=(B,),
        in_specs=[
            pl.BlockSpec((1, N, P), lambda b: (b, 0, 0)),
            pl.BlockSpec((P, E), lambda b: (0, 0)),
            pl.BlockSpec((1, E), lambda b: (0, 0)),
            pl.BlockSpec((1, E), lambda b: (0, 0)),
            pl.BlockSpec((N, E), lambda b: (0, 0)),
        ],
        out_specs=pl.BlockSpec((1, N + 1, E), lambda b: (b, 0, 0)),
        compiler_params=pltpu.CompilerParams(
            dimension_semantics=("parallel",),
            vmem_limit_bytes=VMEM_LIMIT),
    )(patches, pp["patch_w"], pp["patch_b"], pp["pos_cls"], pp["pos_tok"])


def transformer_blocks(x, pp, *, num_heads):
    B, S, E = x.shape
    L = pp["qkv_w"].shape[0]
    M = pp["fc1_w"].shape[2]
    H = num_heads

    def wspec(shape):
        nd = len(shape)
        # layer-streamed weight: block index follows the layer grid axis so
        # double-buffering prefetches layer l+1 weights during layer l compute.
        return pl.BlockSpec((1,) + tuple(shape[1:]),
                            lambda b, l, _nd=nd: (l,) + (0,) * (_nd - 1))

    out, attn = pl.pallas_call(
        vit_blocks_kernel,
        out_shape=(jax.ShapeDtypeStruct((B, S, E), jnp.float32),
                   jax.ShapeDtypeStruct((L, B, H, S, S), jnp.float32)),
        grid=(B, L),
        in_specs=[
            pl.BlockSpec((1, S, E), lambda b, l: (b, 0, 0)),
            wspec((L, 1, E)), wspec((L, 1, E)),                    # ln1 w, b
            wspec((L, E, 3 * E)), wspec((L, 1, 3 * E)),            # fused qkv w, b
            wspec((L, E, E)), wspec((L, 1, E)),                    # proj w, b
            wspec((L, 1, E)), wspec((L, 1, E)),                    # ln2 w, b
            wspec((L, E, M)), wspec((L, 1, M)),                    # fc1 w, b
            wspec((L, M, E)), wspec((L, 1, E)),                    # fc2 w, b
        ],
        out_specs=(pl.BlockSpec((1, S, E), lambda b, l: (b, 0, 0)),
                   pl.BlockSpec((1, 1, H, S, S), lambda b, l: (l, b, 0, 0, 0))),
        compiler_params=pltpu.CompilerParams(
            dimension_semantics=("parallel", "arbitrary"),
            vmem_limit_bytes=VMEM_LIMIT),
    )(x, pp["ln1_w"], pp["ln1_b"], pp["qkv_w"], pp["qkv_b"],
      pp["proj_w"], pp["proj_b"], pp["ln2_w"], pp["ln2_b"],
      pp["fc1_w"], pp["fc1_b"], pp["fc2_w"], pp["fc2_b"])
    return out, attn


def head_forward(cls_final, lnw, lnb, hw, hb):
    B, E = cls_final.shape
    C = hw.shape[1]
    vmem = pl.BlockSpec(memory_space=pltpu.MemorySpace.VMEM)
    return pl.pallas_call(
        head_kernel,
        out_shape=jax.ShapeDtypeStruct((B, C), jnp.float32),
        in_specs=[vmem] * 5,
        out_specs=vmem,
        compiler_params=pltpu.CompilerParams(vmem_limit_bytes=VMEM_LIMIT),
    )(cls_final, lnw, lnb, hw, hb)


def vit_forward(x, pp, *, patch_size, num_heads):
    B, C, Himg, Wimg = x.shape
    p = patch_size
    nh, nw = Himg // p, Wimg // p
    patch_dim = C * p * p
    # Reproduce torch unfold(2,p,p).unfold(3,p,p).contiguous().view(B,-1,patch_dim):
    # both group the same contiguous (C, nh, nw, p, p) buffer into (-1, C*p*p),
    # so this matches exactly for any in_channels.
    patches = (x.reshape(B, C, nh, p, nw, p)
                .transpose(0, 1, 2, 4, 3, 5)
                .reshape(B, -1, patch_dim)).astype(jnp.bfloat16)

    # patch projection + cls token + positional embedding (dropout: identity)
    tok = patch_embed(patches, pp)

    # all transformer blocks fused into one pallas_call
    tok, attn_all = transformer_blocks(tok, pp, num_heads=num_heads)
    attention_maps = [attn_all[i] for i in range(attn_all.shape[0])]

    # final LayerNorm is per-token, so applying it to the cls token only is exact
    cls_final = tok[:, 0, :]
    logits = head_forward(cls_final, pp["ln_w"], pp["ln_b"],
                          pp["head_w"], pp["head_b"])
    return logits, attention_maps


# ----------------------------- parameter packing ---------------------------

def prepare_params(params, *, num_heads):
    """One-time wrapper-side weight packing: stack layers along a leading L
    axis, cast matmul weights to bf16, fold 1/sqrt(hd) into the q columns of
    the fused qkv weight, and pre-fold cls+pos[0]."""
    bf16 = jnp.bfloat16
    E = params["patch_w"].shape[1]
    hd = E // num_heads
    qscale = 1.0 / math.sqrt(hd)

    def stack(key):
        return jnp.stack([blk[key] for blk in params["blocks"]])

    qkv_w = stack("qkv_w")                     # (L, E, 3E)
    qkv_b = stack("qkv_b")                     # (L, 1, 3E)
    qkv_w = qkv_w.at[:, :, :E].multiply(qscale)
    qkv_b = qkv_b.at[:, :, :E].multiply(qscale)

    return {
        "patch_w": params["patch_w"].astype(bf16),
        "patch_b": params["patch_b"],
        "pos_cls": params["cls"] + params["pos"][0:1, :],    # (1, E)
        "pos_tok": params["pos"][1:, :],                     # (N, E)
        "ln_w": params["ln_w"], "ln_b": params["ln_b"],
        "head_w": params["head_w"].astype(bf16),
        "head_b": params["head_b"],
        "ln1_w": stack("ln1_w"), "ln1_b": stack("ln1_b"),
        "qkv_w": qkv_w.astype(bf16), "qkv_b": qkv_b,
        "proj_w": stack("proj_w").astype(bf16), "proj_b": stack("proj_b"),
        "ln2_w": stack("ln2_w"), "ln2_b": stack("ln2_b"),
        "fc1_w": stack("fc1_w").astype(bf16), "fc1_b": stack("fc1_b"),
        "fc2_w": stack("fc2_w").astype(bf16), "fc2_b": stack("fc2_b"),
    }


# ----------------------------- parameter init ------------------------------

def init_params(key, *, img_size, patch_size, in_channels, embed_dim,
                num_heads, num_layers, mlp_dim, num_classes):
    n_patches = (img_size // patch_size) ** 2
    patch_dim = in_channels * patch_size * patch_size
    std = 0.02
    keys = jax.random.split(key, 4 + 4 * num_layers)
    ki = iter(keys)

    def tn(shape):
        # deterministic trunc-normal init (std=0.02), matches torch shapes
        return std * jax.random.truncated_normal(next(ki), -2.0, 2.0, shape,
                                                 jnp.float32)

    params = {
        "patch_w": tn((patch_dim, embed_dim)),
        "patch_b": jnp.zeros((1, embed_dim), jnp.float32),
        "cls": tn((1, embed_dim)),
        "pos": tn((n_patches + 1, embed_dim)),
        "ln_w": jnp.ones((1, embed_dim), jnp.float32),
        "ln_b": jnp.zeros((1, embed_dim), jnp.float32),
        "head_w": tn((embed_dim, num_classes)),
        "head_b": jnp.zeros((1, num_classes), jnp.float32),
        "blocks": [],
    }
    for _ in range(num_layers):
        params["blocks"].append({
            "ln1_w": jnp.ones((1, embed_dim), jnp.float32),
            "ln1_b": jnp.zeros((1, embed_dim), jnp.float32),
            "qkv_w": tn((embed_dim, 3 * embed_dim)),
            "qkv_b": jnp.zeros((1, 3 * embed_dim), jnp.float32),
            "proj_w": tn((embed_dim, embed_dim)),
            "proj_b": jnp.zeros((1, embed_dim), jnp.float32),
            "ln2_w": jnp.ones((1, embed_dim), jnp.float32),
            "ln2_b": jnp.zeros((1, embed_dim), jnp.float32),
            "fc1_w": tn((embed_dim, mlp_dim)),
            "fc1_b": jnp.zeros((1, mlp_dim), jnp.float32),
            "fc2_w": tn((mlp_dim, embed_dim)),
            "fc2_b": jnp.zeros((1, embed_dim), jnp.float32),
        })
    return params


# ----------------------------- main ----------------------------------------

if __name__ == "__main__":
    # Small shapes consistent with the module's forward
    IMG, PATCH, CIN = 16, 4, 1
    EMBED, HEADS, LAYERS, MLP_DIM, CLASSES = 32, 4, 2, 64, 10
    B = 2
    N_TOKENS = (IMG // PATCH) ** 2 + 1  # 17

    key = jax.random.PRNGKey(0)
    pkey, xkey = jax.random.split(key)
    raw_params = init_params(pkey, img_size=IMG, patch_size=PATCH,
                             in_channels=CIN, embed_dim=EMBED, num_heads=HEADS,
                             num_layers=LAYERS, mlp_dim=MLP_DIM,
                             num_classes=CLASSES)
    packed = prepare_params(raw_params, num_heads=HEADS)   # one-time packing
    x = jax.random.normal(xkey, (B, CIN, IMG, IMG), jnp.float32)

    logits, attn_maps = vit_forward(x, packed, patch_size=PATCH,
                                    num_heads=HEADS)
    logits = jax.block_until_ready(logits)
    attn_maps = jax.block_until_ready(attn_maps)

    assert logits.shape == (B, CLASSES)
    assert len(attn_maps) == LAYERS
    assert attn_maps[0].shape == (B, HEADS, N_TOKENS, N_TOKENS)
    assert bool(jnp.all(jnp.isfinite(logits)))
    assert bool(jnp.all(jnp.isfinite(attn_maps[0])))
    # attention rows should sum to ~1 (approx reciprocal => loose tolerance)
    row_sums = jnp.sum(attn_maps[0], axis=-1)
    assert bool(jnp.all(jnp.abs(row_sums - 1.0) < 1e-2))
    print("KERNEL_OK")
</pallas_src>

<mosaic_0001>
module attributes {stable_mosaic.version = 11 : i64} {
  func.func @patch_embed_kernel(%arg0: i32, %arg1: memref<1x16x16xbf16, #tpu.memory_space<vmem>>, %arg2: memref<16x32xbf16, #tpu.memory_space<vmem>>, %arg3: memref<1x32xf32, #tpu.memory_space<vmem>>, %arg4: memref<1x32xf32, #tpu.memory_space<vmem>>, %arg5: memref<16x32xf32, #tpu.memory_space<vmem>>, %arg6: memref<1x17x32xf32, #tpu.memory_space<vmem>>) attributes {dimension_semantics = [#tpu.dimension_semantics<parallel>], iteration_bounds = array<i64: 2>, scalar_prefetch = 0 : i64, scratch_operands = 0 : i64, tpu.core_type = #tpu.core_type<tc>, window_params = [{transform_indices = @transform_0, window_bounds = array<i64: 1, 16, 16>}, {pipeline_mode = #tpu.pipeline_mode<synchronous>, transform_indices = @transform_1, window_bounds = array<i64: 16, 32>}, {pipeline_mode = #tpu.pipeline_mode<synchronous>, transform_indices = @transform_2, window_bounds = array<i64: 1, 32>}, {pipeline_mode = #tpu.pipeline_mode<synchronous>, transform_indices = @transform_3, window_bounds = array<i64: 1, 32>}, {pipeline_mode = #tpu.pipeline_mode<synchronous>, transform_indices = @transform_4, window_bounds = array<i64: 16, 32>}, {transform_indices = @transform_5, window_bounds = array<i64: 1, 17, 32>}]} {
    %c0 = arith.constant 0 : index
    %c0_0 = arith.constant 0 : index
    %c0_1 = arith.constant 0 : index
    %0 = vector.load %arg1[%c0, %c0_0, %c0_1] : memref<1x16x16xbf16, #tpu.memory_space<vmem>>, vector<1x16x16xbf16>
    %1 = vector.shape_cast %0 : vector<1x16x16xbf16> to vector<16x16xbf16>
    %c0_2 = arith.constant 0 : index
    %c0_3 = arith.constant 0 : index
    %2 = vector.load %arg2[%c0_2, %c0_3] : memref<16x32xbf16, #tpu.memory_space<vmem>>, vector<16x32xbf16>
    %cst = arith.constant dense<0.000000e+00> : vector<16x32xf32>
    %3 = tpu.matmul %1, %2, %cst {dimension_numbers = #tpu.dot_dimension_numbers<[1], [0], [0], [1], [0, 0, 1, 1], [], []>} : vector<16x16xbf16>, vector<16x32xbf16>, vector<16x32xf32> -> vector<16x32xf32>
    %c0_4 = arith.constant 0 : index
    %c0_5 = arith.constant 0 : index
    %4 = vector.load %arg3[%c0_4, %c0_5] : memref<1x32xf32, #tpu.memory_space<vmem>>, vector<1x32xf32>
    %5 = vector.broadcast %4 : vector<1x32xf32> to vector<16x32xf32>
    %6 = arith.addf %3, %5 : vector<16x32xf32>
    %c0_6 = arith.constant 0 : index
    %c0_7 = arith.constant 0 : index
    %7 = vector.load %arg5[%c0_6, %c0_7] : memref<16x32xf32, #tpu.memory_space<vmem>>, vector<16x32xf32>
    %8 = arith.addf %6, %7 : vector<16x32xf32>
    %c0_8 = arith.constant 0 : index
    %c0_9 = arith.constant 0 : index
    %9 = vector.load %arg4[%c0_8, %c0_9] : memref<1x32xf32, #tpu.memory_space<vmem>>, vector<1x32xf32>
    %10 = tpu.concatenate %9, %8 in 0 : vector<1x32xf32>, vector<16x32xf32> -> vector<17x32xf32>
    %c0_10 = arith.constant 0 : index
    %c0_11 = arith.constant 0 : index
    %c0_12 = arith.constant 0 : index
    %11 = vector.load %arg6[%c0_10, %c0_11, %c0_12] : memref<1x17x32xf32, #tpu.memory_space<vmem>>, vector<1x17x32xf32>
    %12 = vector.shape_cast %11 : vector<1x17x32xf32> to vector<17x32xf32>
    %13 = vector.shape_cast %10 : vector<17x32xf32> to vector<1x17x32xf32>
    tpu.vector_store %arg6[%c0_10, %c0_11, %c0_12], %13 {strides = array<i32>} : memref<1x17x32xf32, #tpu.memory_space<vmem>>, vector<1x17x32xf32>,
    return
  }
  func.func @transform_0(%arg0: i32) -> (i32, i32, i32) {
    %c0_i32 = arith.constant 0 : i32
    %c0_i32_0 = arith.constant 0 : i32
    %c0_i32_1 = arith.constant 0 : i32
    return %arg0, %c0_i32, %c0_i32_0 : i32, i32, i32
  }
  func.func @transform_1(%arg0: i32) -> (i32, i32) {
    %c0_i32 = arith.constant 0 : i32
    %c0_i32_0 = arith.constant 0 : i32
    %c0_i32_1 = arith.constant 0 : i32
    return %c0_i32, %c0_i32_0 : i32, i32
  }
  func.func @transform_2(%arg0: i32) -> (i32, i32) {
    %c0_i32 = arith.constant 0 : i32
    %c0_i32_0 = arith.constant 0 : i32
    %c0_i32_1 = arith.constant 0 : i32
    return %c0_i32, %c0_i32_0 : i32, i32
  }
  func.func @transform_3(%arg0: i32) -> (i32, i32) {
    %c0_i32 = arith.constant 0 : i32
    %c0_i32_0 = arith.constant 0 : i32
    %c0_i32_1 = arith.constant 0 : i32
    return %c0_i32, %c0_i32_0 : i32, i32
  }
  func.func @transform_4(%arg0: i32) -> (i32, i32) {
    %c0_i32 = arith.constant 0 : i32
    %c0_i32_0 = arith.constant 0 : i32
    %c0_i32_1 = arith.constant 0 : i32
    return %c0_i32, %c0_i32_0 : i32, i32
  }
  func.func @transform_5(%arg0: i32) -> (i32, i32, i32) {
    %c0_i32 = arith.constant 0 : i32
    %c0_i32_0 = arith.constant 0 : i32
    %c0_i32_1 = arith.constant 0 : i32
    return %arg0, %c0_i32, %c0_i32_0 : i32, i32, i32
  }
}

</mosaic_0001>

<bundles_post_ra>
// kernel: tpu_custom_call.1
= control target key start
LH: loop header
LB: loop body
LE: loop exit
PB: predicated region body
PF: predicated region fallthrough
CT: control target
= control target key end

     0   :  { %10 = vsyncpa [#allocation3], 0  ;;  %s853_s0 = inlined_call_operand.hbm [shape: bf16[2,16,16], index: 0, kind: input, shape index: {}]   ;;  %s854_s1 = inlined_call_operand.hbm [shape: bf16[16,32], index: 1, kind: input, shape index: {}]   ;;  %s855_s2 = inlined_call_operand.vmem [shape: f32[1,32], index: 2, kind: input, shape index: {}]   ;;  %s856_s3 = inlined_call_operand.vmem [shape: f32[1,32], index: 3, kind: input, shape index: {}]   ;;  %s857_s4 = inlined_call_operand.hbm [shape: f32[16,32], index: 4, kind: input, shape index: {}]   ;;  %s858_s5 = inlined_call_operand.vmem [shape: f32[2,17,32], index: 5, kind: output, shape index: {}]  }
   0x1   :  { %12 = vsyncpa [#allocation3 + $0x1], 0 }
   0x2   :  { %13 = vsyncpa [#allocation5], 0  ;;  %s704_s18 = smov 0   ;;  %s706_s19 = smov 0  }
   0x3   :  { %s708_s20 = smov 0   ;;  %s710_s21 = smov 0  }
   0x4 LB: > { %s723_s22 = sadd.s32 4294967295, %s663_s21   ;;  %p39_p0 = scmp.ne.s32.totalorder %s655_s19, %s651_s18  ;;  %s663_s21 = sphi %s710_s21, %s874_s21   ;;  %s659_s20 = sphi %s708_s20, %s873_s20   ;;  %s655_s19 = sphi %s706_s19, %s872_s19   ;;  %s651_s18 = sphi %s704_s18, %s871_s18  }
   0x5   : > { %p859_p1 = scmp.eq.s32.totalorder %s723_s22, 0  ;;  %p449_p2 = scmp.ge.s32.totalorder %s663_s21, 1 }
   0x6   : > { %p160_p3 = scmp.lt.s32.totalorder %s663_s21, 3  ;;  %s665_s25 = smov [#allocation4]  }
   0x7   : > { %p731_p4 = por %p859_p1, %p39_p0  ;;  %s172_s26 = sshll.u32 %s665_s25, 4  ;;  %s173_s26 = int_to_ptr.vmem [resolvable:$true] %s172_s26 }
   0x8   : > { %p735_p5 = pnand %p449_p2, %p160_p3  ;;  %s666_s28 = smov [#allocation6]  }
   0x9   : > { %s862_s23 = scalar_select %p731_p4, 1, 0 }
   0xa   : > { %s863_s24 = scalar_select %p735_p5, 1, 0 }
   0xb   : > { %p487_p6 = pneg %p735_p5  ;;  %s191_s29 = sshll.u32 %s666_s28, 4  ;;  %s192_s29 = int_to_ptr.vmem [resolvable:$true] %s191_s29 }
   0xc   : > { %s556_s30 = scalar_lea.vmem %s173_s26, 128  ;;  %p564_p12 = scmp.lt.s32.totalorder %s173_s26, %s173_s26 }
   0xd   : > { %p743_p7 = pnand %p487_p6, %p859_p1  ;;  %p557_p9 = scmp.ne.s32.totalorder %s173_s26, %s556_s30 }
   0xe   : > { %p565_p13 = scmp.lt.s32.totalorder %s556_s30, %s556_s30 }
   0xf   : > { %p547_p8 = pneg %p743_p7 }
  0x10   : > { %p566_p0 = por %p565_p13, %p564_p12 }
  0x11   : > { %p559_p10 = pnand %p557_p9, %p547_p8 }
  0x13   : > { %p560_p11 = pneg %p559_p10 }
  0x15   : > { %p567_p2 = pnand %p566_p0, %p560_p11 }
  0x17   : > { %570 = shalt.err (!%p567_p2)
}
  0x18   : > { %s667_s6 = smov 64   ;;  %s668_s7 = smov 4  }
  0x19   : > { %490 = dma.hbm_to_vmem [thread:$0]  (!%p743_p7), %s854_s1, 128, %s173_s26, [#allocation5], %s667_s6, %s667_s6, %s668_s7  }
  0x1a   : > { %s582_s10 = scalar_lea.vmem %s192_s29, 256  ;;  %p590_p10 = scmp.lt.s32.totalorder %s192_s29, %s192_s29 }
  0x1b   : > { %p583_p3 = scmp.ne.s32.totalorder %s192_s29, %s582_s10  ;;  %p591_p11 = scmp.lt.s32.totalorder %s582_s10, %s582_s10 }
  0x1d   : > { %p585_p6 = pnand %p583_p3, %p547_p8  ;;  %p592_p12 = por %p591_p11, %p590_p10 }
  0x1f   : > { %p586_p9 = pneg %p585_p6 }
  0x21   : > { %p593_p13 = pnand %p592_p12, %p586_p9 }
  0x23   : > { %596 = shalt.err (!%p593_p13)
}
  0x24   : > { %s669_s11 = smov 128   ;;  %s670_s12 = smov 8  }
  0x25   : > { %493 = dma.hbm_to_vmem [thread:$0]  (!%p743_p7), %s857_s4, 256, %s192_s29, [#allocation5], %s669_s11, %s669_s11, %s670_s12  }
  0x26   : > { %s769_s15 = sadd.s32 1, %s663_s21   ;;  %s26_s17 = sadd.s32 1, %s659_s20 }
  0x27   : > { %s23_s16 = ssub.s32 %s663_s21, %s769_s15  ;;  %p33_p0 = scmp.ne.s32.totalorder %s659_s20, %s655_s19 }
  0x28   : > { %p24_p8 = scmp.eq.s32.totalorder %s23_s16, 0  ;;  %p34_p2 = scmp.eq.s32.totalorder %s663_s21, 0 }
  0x29   : > { %p500_p6 = scmp.lt.s32.totalorder %s663_s21, 2  ;;  %s205_s25 = sand.u32 1, %s659_s20  }
  0x2a   : > { %s778_s18 = scalar_select %p24_p8, %s659_s20, %s26_s17  }
  0x2b   : > { %p35_p3 = por %p34_p2, %p33_p0  ;;  %s467_s26 = sshll.u32 %s663_s21, 7 }
  0x2c   : > { %s453_s28 = sshll.u32 %s205_s25, 3  ;;  %s786_s8 = scalar_lea.hbm %s853_s0, %s467_s26 }
  0x2d   : > { %s209_s29 = scalar_lea.vmem [#allocation2], %s453_s28  ;;  %p788_p7 = pnand %p500_p6, %p35_p3 }
  0x2e   : > { %s216_s9 = sshll.u32 %s209_s29, 4  ;;  %s794_s11 = scalar_lea.sflag [#allocation3], %s205_s25  ;;  %s792_s9 = int_to_ptr.vmem [resolvable:$true] %s216_s9 }
  0x2f   : > { %s597_s21 = scalar_lea.hbm %s786_s8, 128  ;;  %p599_p10 = pneg %p788_p7 }
  0x30   : > { %p598_p9 = scmp.ne.s32.totalorder %s786_s8, %s597_s21  ;;  %s602_s14 = scalar_lea.hbm %s853_s0, 256 }
  0x31   : > { %p603_p13 = scmp.lt.s32.totalorder %s786_s8, %s853_s0  ;;  %p604_p8 = scmp.lt.s32.totalorder %s602_s14, %s597_s21 }
  0x32   : > { %p600_p11 = pnand %p599_p10, %p598_p9 }
  0x33   : > { %p605_p0 = por %p604_p8, %p603_p13 }
  0x34   : > { %p601_p12 = pneg %p600_p11 }
  0x36   : > { %p606_p2 = pnand %p605_p0, %p601_p12 }
  0x38   : > { %609 = shalt.err (!%p606_p2)
}
  0x39   : > { %s610_s25 = scalar_lea.vmem %s792_s9, 128  ;;  %s671_s26 = smov [#allocation2]  }
  0x3a   : > { %p611_p3 = scmp.ne.s32.totalorder %s792_s9, %s610_s25  ;;  %s615_s28 = sshll.u32 %s671_s26, 4  ;;  %s616_s28 = int_to_ptr.vmem [resolvable:$false] %s615_s28 }
  0x3b   : > { %s617_s27 = scalar_lea.vmem %s616_s28, 256  ;;  %p618_p11 = scmp.lt.s32.totalorder %s792_s9, %s616_s28 }
  0x3c   : > { %p613_p6 = pnand %p611_p3, %p599_p10  ;;  %p619_p1 = scmp.lt.s32.totalorder %s617_s27, %s610_s25 }
  0x3e   : > { %p614_p9 = pneg %p613_p6  ;;  %p620_p4 = por %p619_p1, %p618_p11 }
  0x40   : > { %p621_p5 = pnand %p620_p4, %p614_p9 }
  0x42   : > { %624 = shalt.err (!%p621_p5)
}
  0x43   : > { %497 = dma.hbm_to_vmem [thread:$0]  (!%p788_p7), %s786_s8, 128, %s792_s9, %s794_s11, %s667_s6, %s667_s6, %s668_s7  }
  0x44   : > { %p866_p10 = scmp.ne.s32.totalorder %s863_s24, 0 }
  0x45   : > { %s230_s30 = sand.u32 (!%p866_p10), 1, %s655_s19   ;;  %p867_p1 = scmp.ne.s32.totalorder (!%p866_p10), %s862_s23, 0 }
  0x46   : > { %228 = sbr.rel (%p866_p10) target bundleno = 289 (0x121), region = 40  ;;  %s457_s29 = sshll.u32 (!%p866_p10), %s230_s30, 3 }
  0x47   : > { %s231_s21 = scalar_lea.sflag (!%p866_p10), [#allocation3], %s230_s30  ;;  %s234_s12 = scalar_lea.vmem (!%p866_p10), [#allocation2], %s457_s29 }
  0x4b   : > { %642 = dma.done.wait (%p867_p1), %s231_s21, 128  }
  0x4c   : > { %644 = vsyncadd (%p867_p1), %s231_s21, 4294967168  ;;  %p868_p4 = scmp.eq.s32.totalorder %s723_s22, 0 }
  0x4e   : > { %646 = dma.done.wait (%p868_p4), [#allocation5], 384   ;;  %p869_p5 = pmov %p868_p4 }
  0x4f   : > { %v672_v0 = vmov 0.0   ;;  %vm673_vm0 = vmmov 0   ;;  %v543_v1 = vld [vmem:[#allocation4] sm:$0xff]   ;;  %v544_v2 = vld [vmem:[%s234_s12] sm:$0xff]   ;;  %vm297_vm1 = vcmask 130048   ;;  %p269_p7 = scmp.lt.s32.totalorder %s723_s22, 1 }
  0x50   : > { %648 = vsyncadd (%p869_p5), [#allocation5], 4294966912  ;;  %470 = vmatprep.subr.bf16.mxu0 %v672_v0  ;;  %472 = vmatprep.mubr.msk.bf16.mxu0 %vm673_vm0, %v672_v0  ;;  %v461_v3 = vld [vmem:[%s855_s2] ss:$0 sm:$0xff]  ;;  %v342_v5 = vld [vmem:[#allocation6] sm:$0xff]  ;;  %vm349_vm2 = vcmask 1040384  }
  0x51   : > { %471 = vmatpush3.bf16.msra.mxu0 %v543_v1  ;;  %s876_s22 = smov (!%p269_p7, %s723_s22), 1  ;;  %v346_v9 = vld [vmem:[%s856_s3] sm:$0x1]  ;;  %vm357_vm3 = vcmask 261120   ;;  %vm360_vm4 = vcmask 253952  }
  0x52   : > { %s476_s6 = smul.u32 24, %s876_s22  ;;  %v343_v11 = vld [vmem:[#allocation6 + $0x8] sm:$0xff] }
  0x54   : > { %473 = vmatmul.mubr.msk.bf16.vlgmr.msra.gmra.mxu0 %vm297_vm1, %v544_v2  ;;  %s273_s11 = scalar_lea.vmem %s858_s5, %s476_s6 }
 0x114   : > { %v335_v4 = vpop.f32.mrf.mxu0 }
 0x115   : > { %v336_v6 = vadd.f32 %v461_v3, %v335_v4 }
 0x116   : > { %v474_v7 = vpop.f32.mrf.mxu0 }
 0x117   : > { %v344_v8 = vadd.f32 %v342_v5, %v336_v6 }
 0x118   : > { %v338_v10 = vpop.f32.mrf.mxu0 }
 0x119   : > { %v350_v12 = vrot.slane %v344_v8, 7  ;;  %v339_v13 = vadd.f32 %v461_v3, %v338_v10 }
 0x11a   : > { %v475_v14 = vpop.f32.mrf.mxu0 }
 0x11b   : > { %v356_v15 = vsel %vm349_vm2, %v346_v9, %v350_v12  ;;  %v345_v16 = vadd.f32 %v343_v11, %v339_v13 }
 0x11c   : > { %358 = vst.msk [vmem:[%s273_s11] sm:$0xff] %vm357_vm3, %v356_v15 }
 0x11d   : > { %v351_v17 = vrot.slane %v345_v16, 7 }
 0x11f   : > { %v352_v18 = vsel %vm349_vm2, %v350_v12, %v351_v17  ;;  %361 = vst.msk [vmem:[%s273_s11 + $0x10] sm:$0x1] %vm360_vm4, %v351_v17 }
 0x120   : > { %359 = vst.msk [vmem:[%s273_s11 + $0x8] sm:$0xff] %vm357_vm3, %v352_v18 }
 0x121 PF: > { %s870_s22 = smov %s778_s18  ;;  %p16_p12 = scmp.ge.s32.totalorder %s769_s15, 4  }
 0x122   : > { %s871_s18 = smov %s655_s19  ;;  %s872_s19 = smov %s659_s20 }
 0x123   : > { %s873_s20 = smov %s870_s22  ;;  %s874_s21 = smov %s769_s15 }
 0x124   :  { %18 = sbr.rel (!%p16_p12) target bundleno = 4 (0x4), region = 88 }
 0x129   :  { %383 = vsyncpa [#allocation3], 1 }
 0x12a   :  { %385 = vsyncpa [#allocation3 + $0x1], 1 }
 0x12b   :  { %386 = vsyncpa [#allocation5], 1 }

</bundles_post_ra>
